<compile_context>
chip_gen: v5e
topology: v5e:2x2
jax: 0.10.0
libtpu: 0.0.40
codegen_flags: <defaults>
</compile_context>

<pallas_src>
import functools

import jax
import jax.numpy as jnp
from jax.experimental import pallas as pl
from jax.experimental.pallas import tpu as pltpu


def _round_up(x, m):
    return (x + m - 1) // m * m


def _mlp_kernel(x_ref, w1_ref, b1_ref, w2_ref, b2_ref, w3_ref, b3_ref, o_ref):
    # One grid step = one batch tile: bf16 operands on the MXU, f32 accumulate,
    # f32 elementwise chain (bias add / ReLU on the VPU, tanh on the EUP).
    x = x_ref[...]
    h = jnp.dot(x, w1_ref[...], preferred_element_type=jnp.float32) + b1_ref[...]
    h = jnp.maximum(h, 0.0)
    h = jnp.dot(h.astype(jnp.bfloat16), w2_ref[...],
                preferred_element_type=jnp.float32) + b2_ref[...]
    h = jnp.maximum(h, 0.0)
    h = jnp.dot(h.astype(jnp.bfloat16), w3_ref[...],
                preferred_element_type=jnp.float32) + b3_ref[...]
    o_ref[...] = jnp.tanh(h).astype(o_ref.dtype)


@functools.partial(jax.jit, static_argnames=("block_b",))
def discrete_actor_forward(state, w1, b1, w2, b2, w3, b3, *, block_b=256):
    """state: (B, state_dim) f32. Weights pre-transposed to (in, out); biases (1, out).
    Returns (B, n_actions) f32 = tanh(relu(relu(x@w1+b1)@w2+b2)@w3+b3)."""
    B, state_dim = state.shape
    hidden = w1.shape[1]
    n_actions = w3.shape[1]

    # MXU / lane-friendly padded feature sizes.
    sd_p = _round_up(state_dim, 128)
    hd_p = _round_up(hidden, 256)      # fills v6e/v7x 256-wide MXU (and v5e 128)
    na_p = _round_up(n_actions, 128)   # lane-dense output store

    # Batch tiling: tile height is a multiple of 8 sublanes, capped at block_b.
    tb = min(block_b, _round_up(B, 8))
    b_p = _round_up(B, tb)
    grid = (b_p // tb,)

    def pad2(a, r, c, dtype):
        return jnp.pad(a, ((0, r - a.shape[0]), (0, c - a.shape[1]))).astype(dtype)

    x_p = pad2(state, b_p, sd_p, jnp.bfloat16)
    w1_p = pad2(w1, sd_p, hd_p, jnp.bfloat16)
    w2_p = pad2(w2, hd_p, hd_p, jnp.bfloat16)
    w3_p = pad2(w3, hd_p, na_p, jnp.bfloat16)
    b1_p = pad2(b1, 1, hd_p, jnp.float32)
    b2_p = pad2(b2, 1, hd_p, jnp.float32)
    b3_p = pad2(b3, 1, na_p, jnp.float32)

    def resident(shape):
        # Weights/biases: same block every grid step -> stay resident in VMEM.
        return pl.BlockSpec(shape, lambda i: (0, 0))

    out = pl.pallas_call(
        _mlp_kernel,
        out_shape=jax.ShapeDtypeStruct((b_p, na_p), jnp.float32),
        grid=grid,
        in_specs=[
            pl.BlockSpec((tb, sd_p), lambda i: (i, 0)),   # streamed batch tile
            resident((sd_p, hd_p)), resident((1, hd_p)),  # layer 1
            resident((hd_p, hd_p)), resident((1, hd_p)),  # layer 2
            resident((hd_p, na_p)), resident((1, na_p)),  # layer 3
        ],
        out_specs=pl.BlockSpec((tb, na_p), lambda i: (i, 0)),
        compiler_params=pltpu.CompilerParams(
            dimension_semantics=("parallel",),
            vmem_limit_bytes=96 << 20),
    )(x_p, w1_p, b1_p, w2_p, b2_p, w3_p, b3_p)

    return out[:B, :n_actions]


def init_params(key, state_dim, n_actions, hidden_dim):
    """Deterministic init mimicking PyTorch nn.Linear default
    (U[-1/sqrt(fan_in), 1/sqrt(fan_in)]).  Weights returned pre-transposed to (in, out)."""
    ks = jax.random.split(key, 6)

    def lin(kw, kb, fan_in, fan_out):
        bound = 1.0 / jnp.sqrt(jnp.float32(fan_in))
        w = jax.random.uniform(kw, (fan_in, fan_out), jnp.float32, -bound, bound)
        b = jax.random.uniform(kb, (1, fan_out), jnp.float32, -bound, bound)
        return w, b

    w1, b1 = lin(ks[0], ks[1], state_dim, hidden_dim)
    w2, b2 = lin(ks[2], ks[3], hidden_dim, hidden_dim)
    w3, b3 = lin(ks[4], ks[5], hidden_dim, n_actions)
    return w1, b1, w2, b2, w3, b3


def reference_forward(state, w1, b1, w2, b2, w3, b3):
    # Mirrors the in-kernel numerics: bf16 matmul operands, f32 accumulation.
    def mm(a, b):
        return jnp.dot(a.astype(jnp.bfloat16), b.astype(jnp.bfloat16),
                       preferred_element_type=jnp.float32)

    h = jax.nn.relu(mm(state, w1) + b1)
    h = jax.nn.relu(mm(h, w2) + b2)
    return jnp.tanh(mm(h, w3) + b3)


if __name__ == "__main__":
    # Small shapes consistent with the module: batch=2, state_dim=32,
    # hidden_dim=32 (module default 256; shrunk for the demo), n_actions=8.
    batch, state_dim, hidden_dim, n_actions = 2, 32, 32, 8

    key = jax.random.PRNGKey(0)
    k_state, k_params = jax.random.split(key)
    state = jax.random.normal(k_state, (batch, state_dim), jnp.float32)
    params = init_params(k_params, state_dim, n_actions, hidden_dim)

    out = discrete_actor_forward(state, *params)
    out = jax.block_until_ready(out)

    ref = reference_forward(state, *params)
    ref_f32 = jnp.tanh(
        jax.nn.relu(jax.nn.relu(state @ params[0] + params[1]) @ params[2] + params[3])
        @ params[4] + params[5])

    assert out.shape == (batch, n_actions)
    assert jnp.allclose(out, ref, atol=1e-2), jnp.max(jnp.abs(out - ref))
    assert jnp.allclose(out, ref_f32, atol=5e-2), jnp.max(jnp.abs(out - ref_f32))

    # TODO(synk): act() (softmax + Gumbel-softmax sampling) is stochastic and
    # left outside the kernel; only the deterministic forward() is implemented.
    print("KERNEL_OK")
</pallas_src>

<mosaic_0001>
module attributes {stable_mosaic.version = 11 : i64} {
  func.func @_mlp_kernel(%arg0: i32, %arg1: memref<8x128xbf16, #tpu.memory_space<vmem>>, %arg2: memref<128x256xbf16, #tpu.memory_space<vmem>>, %arg3: memref<1x256xf32, #tpu.memory_space<vmem>>, %arg4: memref<256x256xbf16, #tpu.memory_space<vmem>>, %arg5: memref<1x256xf32, #tpu.memory_space<vmem>>, %arg6: memref<256x128xbf16, #tpu.memory_space<vmem>>, %arg7: memref<1x128xf32, #tpu.memory_space<vmem>>, %arg8: memref<8x128xf32, #tpu.memory_space<vmem>>) attributes {dimension_semantics = [#tpu.dimension_semantics<parallel>], iteration_bounds = array<i64: 1>, scalar_prefetch = 0 : i64, scratch_operands = 0 : i64, tpu.core_type = #tpu.core_type<tc>, window_params = [{transform_indices = @transform_0, window_bounds = array<i64: 8, 128>}, {pipeline_mode = #tpu.pipeline_mode<synchronous>, transform_indices = @transform_1, window_bounds = array<i64: 128, 256>}, {pipeline_mode = #tpu.pipeline_mode<synchronous>, transform_indices = @transform_2, window_bounds = array<i64: 1, 256>}, {pipeline_mode = #tpu.pipeline_mode<synchronous>, transform_indices = @transform_3, window_bounds = array<i64: 256, 256>}, {pipeline_mode = #tpu.pipeline_mode<synchronous>, transform_indices = @transform_4, window_bounds = array<i64: 1, 256>}, {pipeline_mode = #tpu.pipeline_mode<synchronous>, transform_indices = @transform_5, window_bounds = array<i64: 256, 128>}, {pipeline_mode = #tpu.pipeline_mode<synchronous>, transform_indices = @transform_6, window_bounds = array<i64: 1, 128>}, {transform_indices = @transform_7, window_bounds = array<i64: 8, 128>}]} {
    %c0 = arith.constant 0 : index
    %c0_0 = arith.constant 0 : index
    %0 = vector.load %arg1[%c0, %c0_0] : memref<8x128xbf16, #tpu.memory_space<vmem>>, vector<8x128xbf16>
    %c0_1 = arith.constant 0 : index
    %c0_2 = arith.constant 0 : index
    %1 = vector.load %arg2[%c0_1, %c0_2] : memref<128x256xbf16, #tpu.memory_space<vmem>>, vector<128x256xbf16>
    %cst = arith.constant dense<0.000000e+00> : vector<8x256xf32>
    %2 = tpu.matmul %0, %1, %cst {dimension_numbers = #tpu.dot_dimension_numbers<[1], [0], [0], [1], [0, 0, 1, 1], [], []>} : vector<8x128xbf16>, vector<128x256xbf16>, vector<8x256xf32> -> vector<8x256xf32>
    %c0_3 = arith.constant 0 : index
    %c0_4 = arith.constant 0 : index
    %3 = vector.load %arg3[%c0_3, %c0_4] : memref<1x256xf32, #tpu.memory_space<vmem>>, vector<1x256xf32>
    %4 = vector.broadcast %3 : vector<1x256xf32> to vector<8x256xf32>
    %5 = arith.addf %2, %4 : vector<8x256xf32>
    %cst_5 = arith.constant 0.000000e+00 : f32
    %6 = vector.broadcast %cst_5 : f32 to vector<8x256xf32>
    %7 = arith.maximumf %5, %6 : vector<8x256xf32>
    %8 = arith.truncf %7 : vector<8x256xf32> to vector<8x256xbf16>
    %c0_6 = arith.constant 0 : index
    %c0_7 = arith.constant 0 : index
    %9 = vector.load %arg4[%c0_6, %c0_7] : memref<256x256xbf16, #tpu.memory_space<vmem>>, vector<256x256xbf16>
    %cst_8 = arith.constant dense<0.000000e+00> : vector<8x256xf32>
    %10 = tpu.matmul %8, %9, %cst_8 {dimension_numbers = #tpu.dot_dimension_numbers<[1], [0], [0], [1], [0, 0, 1, 1], [], []>} : vector<8x256xbf16>, vector<256x256xbf16>, vector<8x256xf32> -> vector<8x256xf32>
    %c0_9 = arith.constant 0 : index
    %c0_10 = arith.constant 0 : index
    %11 = vector.load %arg5[%c0_9, %c0_10] : memref<1x256xf32, #tpu.memory_space<vmem>>, vector<1x256xf32>
    %12 = vector.broadcast %11 : vector<1x256xf32> to vector<8x256xf32>
    %13 = arith.addf %10, %12 : vector<8x256xf32>
    %cst_11 = arith.constant 0.000000e+00 : f32
    %14 = vector.broadcast %cst_11 : f32 to vector<8x256xf32>
    %15 = arith.maximumf %13, %14 : vector<8x256xf32>
    %16 = arith.truncf %15 : vector<8x256xf32> to vector<8x256xbf16>
    %c0_12 = arith.constant 0 : index
    %c0_13 = arith.constant 0 : index
    %17 = vector.load %arg6[%c0_12, %c0_13] : memref<256x128xbf16, #tpu.memory_space<vmem>>, vector<256x128xbf16>
    %cst_14 = arith.constant dense<0.000000e+00> : vector<8x128xf32>
    %18 = tpu.matmul %16, %17, %cst_14 {dimension_numbers = #tpu.dot_dimension_numbers<[1], [0], [0], [1], [0, 0, 1, 1], [], []>} : vector<8x256xbf16>, vector<256x128xbf16>, vector<8x128xf32> -> vector<8x128xf32>
    %c0_15 = arith.constant 0 : index
    %c0_16 = arith.constant 0 : index
    %19 = vector.load %arg7[%c0_15, %c0_16] : memref<1x128xf32, #tpu.memory_space<vmem>>, vector<1x128xf32>
    %20 = vector.broadcast %19 : vector<1x128xf32> to vector<8x128xf32>
    %21 = arith.addf %18, %20 : vector<8x128xf32>
    %22 = math.tanh %21 : vector<8x128xf32>
    %c0_17 = arith.constant 0 : index
    %c0_18 = arith.constant 0 : index
    %23 = vector.load %arg8[%c0_17, %c0_18] : memref<8x128xf32, #tpu.memory_space<vmem>>, vector<8x128xf32>
    tpu.vector_store %arg8[%c0_17, %c0_18], %22 {strides = array<i32>} : memref<8x128xf32, #tpu.memory_space<vmem>>, vector<8x128xf32>,
    return
  }
  func.func @transform_0(%arg0: i32) -> (i32, i32) {
    %c0_i32 = arith.constant 0 : i32
    %c0_i32_0 = arith.constant 0 : i32
    return %arg0, %c0_i32 : i32, i32
  }
  func.func @transform_1(%arg0: i32) -> (i32, i32) {
    %c0_i32 = arith.constant 0 : i32
    %c0_i32_0 = arith.constant 0 : i32
    %c0_i32_1 = arith.constant 0 : i32
    return %c0_i32, %c0_i32_0 : i32, i32
  }
  func.func @transform_2(%arg0: i32) -> (i32, i32) {
    %c0_i32 = arith.constant 0 : i32
    %c0_i32_0 = arith.constant 0 : i32
    %c0_i32_1 = arith.constant 0 : i32
    return %c0_i32, %c0_i32_0 : i32, i32
  }
  func.func @transform_3(%arg0: i32) -> (i32, i32) {
    %c0_i32 = arith.constant 0 : i32
    %c0_i32_0 = arith.constant 0 : i32
    %c0_i32_1 = arith.constant 0 : i32
    return %c0_i32, %c0_i32_0 : i32, i32
  }
  func.func @transform_4(%arg0: i32) -> (i32, i32) {
    %c0_i32 = arith.constant 0 : i32
    %c0_i32_0 = arith.constant 0 : i32
    %c0_i32_1 = arith.constant 0 : i32
    return %c0_i32, %c0_i32_0 : i32, i32
  }
  func.func @transform_5(%arg0: i32) -> (i32, i32) {
    %c0_i32 = arith.constant 0 : i32
    %c0_i32_0 = arith.constant 0 : i32
    %c0_i32_1 = arith.constant 0 : i32
    return %c0_i32, %c0_i32_0 : i32, i32
  }
  func.func @transform_6(%arg0: i32) -> (i32, i32) {
    %c0_i32 = arith.constant 0 : i32
    %c0_i32_0 = arith.constant 0 : i32
    %c0_i32_1 = arith.constant 0 : i32
    return %c0_i32, %c0_i32_0 : i32, i32
  }
  func.func @transform_7(%arg0: i32) -> (i32, i32) {
    %c0_i32 = arith.constant 0 : i32
    %c0_i32_0 = arith.constant 0 : i32
    return %arg0, %c0_i32 : i32, i32
  }
}

</mosaic_0001>

<bundles_post_ra>
// kernel: discrete_actor_forward.1
= control target key start
LH: loop header
LB: loop body
LE: loop exit
PB: predicated region body
PF: predicated region fallthrough
CT: control target
= control target key end

     0   :  { %s1291_s1 = inlined_call_operand.vmem [shape: bf16[128,256], index: 1, kind: input, shape index: {}]   ;;  %s1292_s3 = inlined_call_operand.vmem [shape: bf16[256,256], index: 3, kind: input, shape index: {}]   ;;  %s1293_s0 = inlined_call_operand.vmem [shape: bf16[8,128], index: 0, kind: input, shape index: {}]   ;;  %s1294_s5 = inlined_call_operand.vmem [shape: bf16[256,128], index: 5, kind: input, shape index: {}]   ;;  %s1295_s2 = inlined_call_operand.vmem [shape: f32[1,256], index: 2, kind: input, shape index: {}]   ;;  %s1296_s4 = inlined_call_operand.vmem [shape: f32[1,256], index: 4, kind: input, shape index: {}]   ;;  %s1297_s6 = inlined_call_operand.vmem [shape: f32[1,128], index: 6, kind: input, shape index: {}]   ;;  %s1298_s7 = inlined_call_operand.vmem [shape: f32[8,128], index: 7, kind: output, shape index: {}]  }
   0x1   :  { %v635_v0 = vld [vmem:[%s1291_s1 + $0x70] sm:$0xf]  ;;  %v848_v1 = vld [vmem:[%s1291_s1 + $0x74] sm:$0xf0]  ;;  %v847_v2 = vld [vmem:[%s1291_s1 + $0x74] sm:$0xf] }
   0x2   :  { %v636_v3 = vor.u32 %v848_v1, %v635_v0  ;;  %v637_v4 = vld [vmem:[%s1291_s1 + $0x78] sm:$0xf0]  ;;  %v627_v5 = vld [vmem:[%s1291_s1 + $0x60] sm:$0xf]  ;;  %v846_v6 = vld [vmem:[%s1291_s1 + $0x64] sm:$0xf0] }
   0x3   :  { %v640_v7 = vor.u32 %v847_v2, %v637_v4  ;;  %v845_v8 = vld [vmem:[%s1291_s1 + $0x64] sm:$0xf]  ;;  %v629_v9 = vld [vmem:[%s1291_s1 + $0x68] sm:$0xf0]  ;;  %v628_v10 = vor.u32 %v846_v6, %v627_v5  ;;  %v619_v12 = vld [vmem:[%s1291_s1 + $0x50] sm:$0xf] }
   0x4   :  { %129 = vmatpush.bf16.msra.mxu0 %v636_v3  ;;  %v632_v11 = vor.u32 %v845_v8, %v629_v9  ;;  %v844_v13 = vld [vmem:[%s1291_s1 + $0x54] sm:$0xf0]  ;;  %v843_v14 = vld [vmem:[%s1291_s1 + $0x54] sm:$0xf]  ;;  %v621_v15 = vld [vmem:[%s1291_s1 + $0x58] sm:$0xf0] }
   0x5   :  { %142 = vmatpush.bf16.msra.mxu1 %v640_v7  ;;  %v620_v16 = vor.u32 %v844_v13, %v619_v12  ;;  %v624_v17 = vor.u32 %v843_v14, %v621_v15  ;;  %v611_v18 = vld [vmem:[%s1291_s1 + $0x40] sm:$0xf]  ;;  %v842_v19 = vld [vmem:[%s1291_s1 + $0x44] sm:$0xf0]  ;;  %v841_v20 = vld [vmem:[%s1291_s1 + $0x44] sm:$0xf] }
   0x6   :  { %v613_v21 = vld [vmem:[%s1291_s1 + $0x48] sm:$0xf0]  ;;  %v612_v22 = vor.u32 %v842_v19, %v611_v18  ;;  %v699_v23 = vld [vmem:[%s1292_s3 + $0x70] sm:$0xf]  ;;  %v864_v24 = vld [vmem:[%s1292_s3 + $0x74] sm:$0xf0] }
   0x7   :  { %v763_v25 = vld [vmem:[%s1292_s3 + $0xf0] sm:$0xf]  ;;  %v616_v26 = vor.u32 %v841_v20, %v613_v21  ;;  %v840_v28 = vld [vmem:[%s1291_s1 + $0x34] sm:$0xf0]  ;;  %v700_v29 = vor.u32 %v864_v24, %v699_v23  ;;  %v839_v31 = vld [vmem:[%s1291_s1 + $0x34] sm:$0xf] }
   0x8   :  { %130 = vmatpush.bf16.msra.mxu0 %v628_v10  ;;  %v603_v27 = vld [vmem:[%s1291_s1 + $0x30] sm:$0xf]  ;;  %v880_v30 = vld [vmem:[%s1292_s3 + $0xf4] sm:$0xf0]  ;;  %v605_v32 = vld [vmem:[%s1291_s1 + $0x38] sm:$0xf0] }
   0x9   :  { %143 = vmatpush.bf16.msra.mxu1 %v632_v11  ;;  %v764_v33 = vor.u32 %v880_v30, %v763_v25  ;;  %v691_v34 = vld [vmem:[%s1292_s3 + $0x60] sm:$0xf]  ;;  %357 = vmatpush.bf16.msra.mxu2 %v700_v29  ;;  %v862_v35 = vld [vmem:[%s1292_s3 + $0x64] sm:$0xf0]  ;;  %v604_v38 = vor.u32 %v840_v28, %v603_v27  ;;  %v608_v43 = vor.u32 %v839_v31, %v605_v32  ;;  %v837_v44 = vld [vmem:[%s1291_s1 + $0x24] sm:$0xf] }
   0xa   :  { %v755_v36 = vld [vmem:[%s1292_s3 + $0xe0] sm:$0xf]  ;;  %v878_v37 = vld [vmem:[%s1292_s3 + $0xe4] sm:$0xf0]  ;;  %v692_v41 = vor.u32 %v862_v35, %v691_v34  ;;  %v683_v45 = vld [vmem:[%s1292_s3 + $0x50] sm:$0xf] }
   0xb   :  { %v595_v39 = vld [vmem:[%s1291_s1 + $0x20] sm:$0xf]  ;;  %v838_v40 = vld [vmem:[%s1291_s1 + $0x24] sm:$0xf0]  ;;  %370 = vmatpush.bf16.msra.mxu3 %v764_v33  ;;  %v756_v42 = vor.u32 %v878_v37, %v755_v36  ;;  %v860_v46 = vld [vmem:[%s1292_s3 + $0x54] sm:$0xf0] }
   0xc   :  { %131 = vmatpush.bf16.msra.mxu0 %v620_v16  ;;  %v597_v47 = vld [vmem:[%s1291_s1 + $0x28] sm:$0xf0]  ;;  %v747_v48 = vld [vmem:[%s1292_s3 + $0xd0] sm:$0xf]  ;;  %v876_v49 = vld [vmem:[%s1292_s3 + $0xd4] sm:$0xf0]  ;;  %v684_v50 = vor.u32 %v860_v46, %v683_v45  ;;  %v596_v51 = vor.u32 %v838_v40, %v595_v39 }
   0xd   :  { %144 = vmatpush.bf16.msra.mxu1 %v624_v17  ;;  %358 = vmatpush.bf16.msra.mxu2 %v692_v41  ;;  %v587_v52 = vld [vmem:[%s1291_s1 + $0x10] sm:$0xf]  ;;  %v748_v53 = vor.u32 %v876_v49, %v747_v48  ;;  %v675_v54 = vld [vmem:[%s1292_s3 + $0x40] sm:$0xf]  ;;  %v858_v55 = vld [vmem:[%s1292_s3 + $0x44] sm:$0xf0]  ;;  %v600_v56 = vor.u32 %v837_v44, %v597_v47 }
   0xe   :  { %v836_v57 = vld [vmem:[%s1291_s1 + $0x14] sm:$0xf0]  ;;  %v739_v58 = vld [vmem:[%s1292_s3 + $0xc0] sm:$0xf]  ;;  %v874_v59 = vld [vmem:[%s1292_s3 + $0xc4] sm:$0xf0]  ;;  %v676_v63 = vor.u32 %v858_v55, %v675_v54 }
   0xf   :  { %371 = vmatpush.bf16.msra.mxu3 %v756_v42  ;;  %v835_v60 = vld [vmem:[%s1291_s1 + $0x14] sm:$0xf]  ;;  %v589_v61 = vld [vmem:[%s1291_s1 + $0x18] sm:$0xf0]  ;;  %v579_v62 = vld [vmem:[%s1291_s1] sm:$0xf]  ;;  %v588_v0 = vor.u32 %v836_v57, %v587_v52  ;;  %v740_v2 = vor.u32 %v874_v59, %v739_v58 }
  0x10   :  { %132 = vmatpush.bf16.msra.mxu0 %v612_v22  ;;  %v834_v1 = vld [vmem:[%s1291_s1 + $0x4] sm:$0xf0]  ;;  %v667_v3 = vld [vmem:[%s1292_s3 + $0x30] sm:$0xf]  ;;  %v856_v4 = vld [vmem:[%s1292_s3 + $0x34] sm:$0xf0]  ;;  %v592_v5 = vor.u32 %v835_v60, %v589_v61 }
  0x11   :  { %145 = vmatpush.bf16.msra.mxu1 %v616_v26  ;;  %359 = vmatpush.bf16.msra.mxu2 %v684_v50  ;;  %v833_v6 = vld [vmem:[%s1291_s1 + $0x4] sm:$0xf]  ;;  %v731_v7 = vld [vmem:[%s1292_s3 + $0xb0] sm:$0xf]  ;;  %v872_v8 = vld [vmem:[%s1292_s3 + $0xb4] sm:$0xf0]  ;;  %v668_v14 = vor.u32 %v856_v4, %v667_v3  ;;  %v580_v15 = vor.u32 %v834_v1, %v579_v62 }
  0x12   :  { %v581_v9 = vld [vmem:[%s1291_s1 + $0x8] sm:$0xf0]  ;;  %v863_v10 = vld [vmem:[%s1292_s3 + $0x74] sm:$0xf]  ;;  %v701_v11 = vld [vmem:[%s1292_s3 + $0x78] sm:$0xf0]  ;;  %v732_v16 = vor.u32 %v872_v8, %v731_v7 }
  0x13   :  { %372 = vmatpush.bf16.msra.mxu3 %v748_v53  ;;  %v879_v12 = vld [vmem:[%s1292_s3 + $0xf4] sm:$0xf]  ;;  %v765_v13 = vld [vmem:[%s1292_s3 + $0xf8] sm:$0xf0]  ;;  %v659_v17 = vld [vmem:[%s1292_s3 + $0x20] sm:$0xf]  ;;  %v584_v19 = vor.u32 %v833_v6, %v581_v9  ;;  %v704_v20 = vor.u32 %v863_v10, %v701_v11 }
  0x14   :  { %133 = vmatpush.bf16.msra.mxu0 %v604_v38  ;;  %v854_v18 = vld [vmem:[%s1292_s3 + $0x24] sm:$0xf0]  ;;  %v723_v21 = vld [vmem:[%s1292_s3 + $0xa0] sm:$0xf]  ;;  %v768_v23 = vor.u32 %v879_v12, %v765_v13  ;;  %v861_v24 = vld [vmem:[%s1292_s3 + $0x64] sm:$0xf] }
  0x15   :  { %146 = vmatpush.bf16.msra.mxu1 %v608_v43  ;;  %360 = vmatpush.bf16.msra.mxu2 %v676_v63  ;;  %v870_v22 = vld [vmem:[%s1292_s3 + $0xa4] sm:$0xf0]  ;;  %v693_v25 = vld [vmem:[%s1292_s3 + $0x68] sm:$0xf0]  ;;  %v877_v26 = vld [vmem:[%s1292_s3 + $0xe4] sm:$0xf]  ;;  %v660_v28 = vor.u32 %v854_v18, %v659_v17 }
  0x16   :  { %v757_v27 = vld [vmem:[%s1292_s3 + $0xe8] sm:$0xf0]  ;;  %v26_v29 = vld [vmem:[%s1293_s0] sm:$0xf]  ;;  %v724_v30 = vor.u32 %v870_v22, %v723_v21  ;;  %v696_v31 = vor.u32 %v861_v24, %v693_v25  ;;  %v859_v33 = vld [vmem:[%s1292_s3 + $0x54] sm:$0xf] }
  0x17   :  { %373 = vmatpush.bf16.msra.mxu3 %v740_v2  ;;  %v760_v32 = vor.u32 %v877_v26, %v757_v27  ;;  %v685_v34 = vld [vmem:[%s1292_s3 + $0x58] sm:$0xf0]  ;;  %v875_v35 = vld [vmem:[%s1292_s3 + $0xd4] sm:$0xf]  ;;  %v857_v39 = vld [vmem:[%s1292_s3 + $0x44] sm:$0xf] }
  0x18   :  { %134 = vmatpush.bf16.msra.mxu0 %v596_v51  ;;  %v749_v36 = vld [vmem:[%s1292_s3 + $0xd8] sm:$0xf0]  ;;  %v688_v37 = vor.u32 %v859_v33, %v685_v34  ;;  %v677_v40 = vld [vmem:[%s1292_s3 + $0x48] sm:$0xf0]  ;;  %v873_v41 = vld [vmem:[%s1292_s3 + $0xc4] sm:$0xf] }
  0x19   :  { %147 = vmatpush.bf16.msra.mxu1 %v600_v56  ;;  %361 = vmatpush.bf16.msra.mxu2 %v668_v14  ;;  %v752_v38 = vor.u32 %v875_v35, %v749_v36  ;;  %v741_v42 = vld [vmem:[%s1292_s3 + $0xc8] sm:$0xf0]  ;;  %v680_v43 = vor.u32 %v857_v39, %v677_v40  ;;  %v855_v45 = vld [vmem:[%s1292_s3 + $0x34] sm:$0xf]  ;;  %v669_v46 = vld [vmem:[%s1292_s3 + $0x38] sm:$0xf0] }
  0x1a   :  { %v744_v44 = vor.u32 %v873_v41, %v741_v42  ;;  %v871_v47 = vld [vmem:[%s1292_s3 + $0xb4] sm:$0xf]  ;;  %v733_v48 = vld [vmem:[%s1292_s3 + $0xb8] sm:$0xf0]  ;;  %v672_v49 = vor.u32 %v855_v45, %v669_v46  ;;  %v853_v51 = vld [vmem:[%s1292_s3 + $0x24] sm:$0xf] }
  0x1b   :  { %374 = vmatpush.bf16.msra.mxu3 %v732_v16  ;;  %v736_v50 = vor.u32 %v871_v47, %v733_v48  ;;  %v661_v52 = vld [vmem:[%s1292_s3 + $0x28] sm:$0xf0]  ;;  %v869_v53 = vld [vmem:[%s1292_s3 + $0xa4] sm:$0xf]  ;;  %v651_v57 = vld [vmem:[%s1292_s3 + $0x10] sm:$0xf] }
  0x1c   :  { %135 = vmatpush.bf16.msra.mxu0 %v588_v0  ;;  %v725_v54 = vld [vmem:[%s1292_s3 + $0xa8] sm:$0xf0]  ;;  %v664_v55 = vor.u32 %v853_v51, %v661_v52  ;;  %v852_v58 = vld [vmem:[%s1292_s3 + $0x14] sm:$0xf0]  ;;  %v715_v59 = vld [vmem:[%s1292_s3 + $0x90] sm:$0xf] }
  0x1d   :  { %148 = vmatpush.bf16.msra.mxu1 %v592_v5  ;;  %362 = vmatpush.bf16.msra.mxu2 %v660_v28  ;;  %v728_v56 = vor.u32 %v869_v53, %v725_v54  ;;  %v652_v60 = vor.u32 %v852_v58, %v651_v57  ;;  %v868_v61 = vld [vmem:[%s1292_s3 + $0x94] sm:$0xf0]  ;;  %v851_v62 = vld [vmem:[%s1292_s3 + $0x14] sm:$0xf]  ;;  %v653_v63 = vld [vmem:[%s1292_s3 + $0x18] sm:$0xf0] }
  0x1e   :  { %v716_v0 = vor.u32 %v868_v61, %v715_v59  ;;  %v656_v1 = vor.u32 %v851_v62, %v653_v63  ;;  %v867_v2 = vld [vmem:[%s1292_s3 + $0x94] sm:$0xf]  ;;  %v717_v3 = vld [vmem:[%s1292_s3 + $0x98] sm:$0xf0]  ;;  %v643_v5 = vld [vmem:[%s1292_s3] sm:$0xf] }
  0x1f   :  { %375 = vmatpush.bf16.msra.mxu3 %v724_v30  ;;  %v720_v4 = vor.u32 %v867_v2, %v717_v3  ;;  %v850_v6 = vld [vmem:[%s1292_s3 + $0x4] sm:$0xf0]  ;;  %v707_v7 = vld [vmem:[%s1292_s3 + $0x80] sm:$0xf]  ;;  %v849_v10 = vld [vmem:[%s1292_s3 + $0x4] sm:$0xf] }
  0x20   :  { %136 = vmatpush.bf16.msra.mxu0 %v580_v15  ;;  %v644_v8 = vor.u32 %v850_v6, %v643_v5  ;;  %v866_v9 = vld [vmem:[%s1292_s3 + $0x84] sm:$0xf0]  ;;  %v645_v11 = vld [vmem:[%s1292_s3 + $0x8] sm:$0xf0]  ;;  %v865_v14 = vld [vmem:[%s1292_s3 + $0x84] sm:$0xf] }
  0x21   :  { %149 = vmatpush.bf16.msra.mxu1 %v584_v19  ;;  %363 = vmatpush.bf16.msra.mxu2 %v652_v60  ;;  %v708_v12 = vor.u32 %v866_v9, %v707_v7  ;;  %v648_v13 = vor.u32 %v849_v10, %v645_v11  ;;  %v709_v15 = vld [vmem:[%s1292_s3 + $0x88] sm:$0xf0]  ;;  %v896_v17 = vld [vmem:[%s1294_s5 + $0x78] sm:$0xff]  ;;  %v895_v19 = vld [vmem:[%s1294_s5 + $0x70] sm:$0xff] }
  0x22   :  { %v712_v16 = vor.u32 %v865_v14, %v709_v15  ;;  %v888_v18 = vld [vmem:[%s1294_s5 + $0x38] sm:$0xff]  ;;  %v894_v21 = vld [vmem:[%s1294_s5 + $0x68] sm:$0xff]  ;;  %v885_v24 = vld [vmem:[%s1294_s5 + $0x20] sm:$0xff] }
  0x23   :  { %137 = vmatmul.bf16.vlgmr.msra.gmra.mxu0 %v26_v29  ;;  %376 = vmatpush.bf16.msra.mxu3 %v716_v0  ;;  %v886_v22 = vld [vmem:[%s1294_s5 + $0x28] sm:$0xff]  ;;  %v892_v25 = vld [vmem:[%s1294_s5 + $0x58] sm:$0xff]  ;;  %v43_v26 = vld [vmem:[%s1295_s2] sm:$0x3] }
  0x24   :  { %383 = vmatpush.bf16.msrb.mxu0 %v704_v20  ;;  %150 = vmatmul.bf16.vlgmr.msra.gmra.mxu1 %v26_v29  ;;  %v887_v20 = vld [vmem:[%s1294_s5 + $0x30] sm:$0xff]  ;;  %v45_v28 = vperm.slane %v43_v26, 0  ;;  %v46_v29 = vperm.slane %v43_v26, 1  ;;  %v884_v40 = vld [vmem:[%s1294_s5 + $0x18] sm:$0xff]  ;;  %v890_v41 = vld [vmem:[%s1294_s5 + $0x48] sm:$0xff] }
  0x25   :  { %396 = vmatpush.bf16.msrb.mxu1 %v768_v23  ;;  %364 = vmatpush.bf16.msra.mxu2 %v644_v8  ;;  %v893_v23 = vld [vmem:[%s1294_s5 + $0x60] sm:$0xff]  ;;  %v891_v27 = vld [vmem:[%s1294_s5 + $0x50] sm:$0xff] }
  0x26   :  { %v883_v42 = vld [vmem:[%s1294_s5 + $0x10] sm:$0xff]  ;;  %v881_v45 = vld [vmem:[%s1294_s5] sm:$0xff] }
  0x27   :  { %377 = vmatpush.bf16.msra.mxu3 %v708_v12  ;;  %v191_v46 = vld [vmem:[%s1296_s4] sm:$0x3] }
  0x28   :  { %384 = vmatpush.bf16.msrb.mxu0 %v696_v31  ;;  %v194_v47 = vperm.slane %v191_v46, 1  ;;  %v193_v52 = vperm.slane %v191_v46, 0  ;;  %v897_v2 = vld [vmem:[%s1297_s6] ss:$0 sm:$0xff] }
  0x29   :  { %397 = vmatpush.bf16.msrb.mxu1 %v760_v32  ;;  %545 = vmatpush.bf16.msrb.mxu2 %v888_v18 }
  0x2b   :  { %558 = vmatpush.bf16.msrb.mxu3 %v896_v17 }
  0x2c   :  { %385 = vmatpush.bf16.msrb.mxu0 %v688_v37 }
  0x2d   :  { %398 = vmatpush.bf16.msrb.mxu1 %v752_v38  ;;  %546 = vmatpush.bf16.msrb.mxu2 %v887_v20 }
  0x2f   :  { %559 = vmatpush.bf16.msrb.mxu3 %v895_v19 }
  0x30   :  { %386 = vmatpush.bf16.msrb.mxu0 %v680_v43  ;;  %v889_v43 = vld [vmem:[%s1294_s5 + $0x40] sm:$0xff] }
  0x31   :  { %399 = vmatpush.bf16.msrb.mxu1 %v744_v44  ;;  %547 = vmatpush.bf16.msrb.mxu2 %v886_v22  ;;  %v882_v44 = vld [vmem:[%s1294_s5 + $0x8] sm:$0xff] }
  0x33   :  { %560 = vmatpush.bf16.msrb.mxu3 %v894_v21 }
  0x34   :  { %387 = vmatpush.bf16.msrb.mxu0 %v672_v49 }
  0x35   :  { %400 = vmatpush.bf16.msrb.mxu1 %v736_v50  ;;  %548 = vmatpush.bf16.msrb.mxu2 %v885_v24 }
  0x37   :  { %561 = vmatpush.bf16.msrb.mxu3 %v893_v23 }
  0x38   :  { %388 = vmatpush.bf16.msrb.mxu0 %v664_v55 }
  0x39   :  { %401 = vmatpush.bf16.msrb.mxu1 %v728_v56  ;;  %549 = vmatpush.bf16.msrb.mxu2 %v884_v40 }
  0x3b   :  { %562 = vmatpush.bf16.msrb.mxu3 %v892_v25 }
  0x3c   :  { %389 = vmatpush.bf16.msrb.mxu0 %v656_v1 }
  0x3d   :  { %402 = vmatpush.bf16.msrb.mxu1 %v720_v4  ;;  %550 = vmatpush.bf16.msrb.mxu2 %v883_v42 }
  0x3f   :  { %563 = vmatpush.bf16.msrb.mxu3 %v891_v27 }
  0x40   :  { %390 = vmatpush.bf16.msrb.mxu0 %v648_v13 }
  0x41   :  { %403 = vmatpush.bf16.msrb.mxu1 %v712_v16  ;;  %551 = vmatpush.bf16.msrb.mxu2 %v882_v44 }
  0x43   :  { %564 = vmatpush.bf16.msrb.mxu3 %v890_v41 }
  0x45   :  { %552 = vmatpush.bf16.msrb.mxu2 %v881_v45 }
  0x47   :  { %565 = vmatpush.bf16.msrb.mxu3 %v889_v43 }
  0xa0   :  { %v138_v30 = vpop.f32.mrf.mxu0 }
  0xa1   :  { %v139_v31 = vadd.f32 %v138_v30, %v45_v28  ;;  %v151_v32 = vpop.f32.mrf.mxu1 }
  0xa2   :  { %v152_v33 = vadd.f32 %v151_v32, %v46_v29 }
  0xa3   :  { %v155_v34 = vmax.f32 %v139_v31, 0.0 }
  0xa4   :  { %v156_v35 = vmax.f32 %v152_v33, 0.0 }
  0xa5   :  { %v157_v36 = vpack.c.bf16 %v155_v34, %v155_v34 }
  0xa6   :  { %v158_v37 = vpack.c.bf16 %v156_v35, %v156_v35 }
  0xa7   :  { %365 = vmatmul.bf16.vlgmr.msra.gmra.mxu2 %v157_v36  ;;  %391 = vmatmul.bf16.vlgmr.msrb.gmra.mxu0 %v157_v36 }
  0xa8   :  { %378 = vmatmul.bf16.vlgmr.msra.gmra.mxu3 %v158_v37  ;;  %404 = vmatmul.bf16.vlgmr.msrb.gmra.mxu1 %v158_v37  ;;  %v140_v38 = vpop.f32.mrf.mxu0 }
  0xa9   :  { %v153_v39 = vpop.f32.mrf.mxu1 }
 0x124   :  { %v392_v48 = vpop.f32.mrf.mxu0 }
 0x125   :  { %v393_v49 = vadd.f32 %v392_v48, %v194_v47  ;;  %v405_v50 = vpop.f32.mrf.mxu1 }
 0x127   :  { %v406_v51 = vadd.f32 %v405_v50, %v393_v49 }
 0x129   :  { %v410_v53 = vmax.f32 %v406_v51, 0.0 }
 0x12a   :  { %v366_v54 = vpop.f32.mrf.mxu2 }
 0x12b   :  { %v412_v55 = vpack.c.bf16 %v410_v53, %v410_v53  ;;  %v367_v56 = vadd.f32 %v366_v54, %v193_v52  ;;  %v379_v57 = vpop.f32.mrf.mxu3 }
 0x12c   :  { %v394_v58 = vpop.f32.mrf.mxu0 }
 0x12d   :  { %v380_v59 = vadd.f32 %v379_v57, %v367_v56  ;;  %v407_v60 = vpop.f32.mrf.mxu1  ;;  %566 = vmatmul.bf16.vlgmr.msrb.gmra.mxu3 %v412_v55 }
 0x12f   :  { %v409_v61 = vmax.f32 %v380_v59, 0.0 }
 0x131   :  { %v411_v62 = vpack.c.bf16 %v409_v61, %v409_v61 }
 0x132   :  { %v368_v63 = vpop.f32.mrf.mxu2 }
 0x133   :  { %v381_v0 = vpop.f32.mrf.mxu3  ;;  %553 = vmatmul.bf16.vlgmr.msrb.gmra.mxu2 %v411_v62 }
 0x1b0   :  { %v567_v1 = vpop.f32.mrf.mxu3 }
 0x1b6   :  { %v554_v3 = vpop.f32.mrf.mxu2 }
 0x1b7   :  { %v555_v4 = vadd.f32 %v897_v2, %v554_v3 }
 0x1b8   :  { %v569_v5 = vpop.f32.mrf.mxu3 }
 0x1b9   :  { %v568_v6 = vadd.f32 %v567_v1, %v555_v4 }
 0x1bb   :  { %898 = vtanh.f32 %v568_v6 }
 0x1be   :  { %v556_v7 = vpop.f32.mrf.mxu2 }
 0x1c1   :  { %v899_v8 = vpop.eup %898 }
 0x1c2   :  { %572 = vst [vmem:[%s1298_s7] sm:$0xff] %v899_v8 }

</bundles_post_ra>
